<compile_context>
chip_gen: v5e
topology: v5e:2x2
jax: 0.10.0
libtpu: 0.0.40
codegen_flags: <defaults>
</compile_context>

<pallas_src>
import functools

import jax
import jax.numpy as jnp
from jax.experimental import pallas as pl
from jax.experimental.pallas import tpu as pltpu

_NEG = -1e30  # large-negative mask value (avoids inf-inf NaN hazards)


def _round_up(x, m):
    return (x + m - 1) // m * m


# ---------------------------------------------------------------------------
# Kernel
# ---------------------------------------------------------------------------
def _softmax_ce_kernel(emb_ref, w_ref, bias_ref, lab_ref,
                       loss_ref, correct_ref,
                       m_ref, l_ref, tgt_ref, idx_ref,
                       *, tile_c):
    j = pl.program_id(1)  # class-tile index (reduction axis, innermost)

    # ---- init running state at the first C tile of this B tile ----
    @pl.when(j == 0)
    def _init():
        m_ref[...] = jnp.full_like(m_ref, jnp.float32(_NEG))
        l_ref[...] = jnp.zeros_like(l_ref)
        tgt_ref[...] = jnp.zeros_like(tgt_ref)
        idx_ref[...] = jnp.zeros_like(idx_ref)

    e = emb_ref[...]        # [TB, Dp]  bf16 (pre-cast in wrapper)
    w = w_ref[...]          # [Dp, TC]  bf16 (pre-transposed [D, C] layout)
    b = bias_ref[...]       # [1, TC]   f32; padded classes pre-set to -1e30
    lab = lab_ref[...]      # [TB, 1]   int32

    # logits = e @ w + b : K on sublanes, N on lanes -> native MXU layout, no transpose.
    logits = jax.lax.dot_general(
        e, w,
        dimension_numbers=(((1,), (0,)), ((), ())),
        preferred_element_type=jnp.float32) + b            # [TB, TC] f32

    # global class indices of this tile (padded classes already masked via bias)
    col = jax.lax.broadcasted_iota(jnp.int32, logits.shape, 1) + j * tile_c

    # ---- streaming logsumexp ----
    tile_max = jnp.max(logits, axis=-1, keepdims=True)     # [TB, 1]
    m_old = m_ref[...]
    m_new = jnp.maximum(m_old, tile_max)
    p = jnp.exp(logits - m_new)
    l_ref[...] = jnp.exp(m_old - m_new) * l_ref[...] + jnp.sum(
        p, axis=-1, keepdims=True)

    # ---- target (label) logit: one-hot hits exactly one C tile ----
    onehot = (col == lab).astype(jnp.float32)               # [TB, TC]
    tgt_ref[...] += jnp.sum(logits * onehot, axis=-1, keepdims=True)

    # ---- running argmax (first occurrence, matching torch.max tie-breaking) ----
    big = jnp.int32(1 << 30)
    tile_arg = jnp.min(jnp.where(logits == tile_max, col, big),
                       axis=-1, keepdims=True)              # [TB, 1] int32
    idx_ref[...] = jnp.where(tile_max > m_old, tile_arg, idx_ref[...])

    m_ref[...] = m_new

    # ---- finalize at the last C tile: per-row loss and correctness ----
    @pl.when(j == pl.num_programs(1) - 1)
    def _finalize():
        lse = m_ref[...] + jnp.log(l_ref[...])
        loss_ref[...] = lse - tgt_ref[...]                               # [TB, 1]
        correct_ref[...] = (idx_ref[...] == lab).astype(jnp.float32)     # [TB, 1]


# ---------------------------------------------------------------------------
# Tile selection (VMEM-budgeted, v7x-safe)
# ---------------------------------------------------------------------------
def _vmem_estimate(tile_b, tile_c, d_pad):
    return (2 * d_pad * tile_c * 2          # weights bf16, double-buffered
            + 2 * tile_b * d_pad * 2        # embeddings bf16, double-buffered
            + 2 * 8 * tile_c * 4            # bias (padded to 8 sublanes), dbl-buffered
            + 6 * tile_b * tile_c * 4       # f32 logits + elementwise temporaries
            + 64 * tile_b)                  # labels / outputs / per-row scratch


def choose_tile_c(num_classes, embedding_size, tile_c=1024, tile_b_max=256,
                  budget=40 << 20):
    """Class-tile width: multiple of 128 (256-friendly), capped at padded C,
    shrunk until the VMEM estimate fits a v7x-safe budget."""
    d_pad = _round_up(embedding_size, 8)
    tile_c = min(_round_up(tile_c, 128), _round_up(num_classes, 128))
    while tile_c > 128 and _vmem_estimate(tile_b_max, tile_c, d_pad) > budget:
        tile_c = _round_up(tile_c // 2, 128)
    return tile_c


def choose_tile_b(batch, tile_b=256):
    """Batch-tile height: multiple of 16 (bf16 sublane packing), capped at the padded
    batch; keeps >= 2 batch tiles (when batch allows) so v7x's 2nd TC gets work."""
    b_pad = _round_up(batch, 16)
    tile_b = min(_round_up(tile_b, 16), b_pad)
    if b_pad // tile_b < 2 and b_pad >= 32:
        tile_b = _round_up((b_pad + 1) // 2, 16)
    return tile_b


# ---------------------------------------------------------------------------
# One-time parameter preparation (hoisted out of the forward path)
# ---------------------------------------------------------------------------
def prepare_softmax_params(weights, bias, *, tile_c):
    """weights [C, D], bias [C]  ->  (w_p [d_pad, c_pad] bf16, bias_p [1, c_pad] f32).

    Pre-transposes to the MXU-native [D, C] layout (D only padded to a multiple of 8
    sublanes) and bakes the padded-class mask into the bias (-1e30)."""
    C, D = weights.shape
    d_pad = _round_up(D, 8)
    c_pad = _round_up(C, tile_c)
    w_p = jnp.zeros((d_pad, c_pad), jnp.bfloat16).at[:D, :C].set(
        weights.T.astype(jnp.bfloat16))
    bias_p = jnp.full((1, c_pad), _NEG, jnp.float32).at[0, :C].set(
        bias.astype(jnp.float32))
    return w_p, bias_p


# ---------------------------------------------------------------------------
# Forward
# ---------------------------------------------------------------------------
def softmax_ce_forward(embeddings, labels, w_p, bias_p, *, tile_b, tile_c):
    """embeddings [B, D] f32, labels [B] int, prepared (w_p, bias_p) -> (loss, acc)."""
    B, D = embeddings.shape
    d_pad, c_pad = w_p.shape
    assert c_pad % tile_c == 0
    b_pad = _round_up(B, tile_b)

    # bf16 once in the wrapper (the embedding block is j-invariant inside the kernel).
    emb_p = jnp.zeros((b_pad, d_pad), jnp.bfloat16).at[:B, :D].set(
        embeddings.astype(jnp.bfloat16))
    lab_p = jnp.zeros((b_pad, 1), jnp.int32).at[:B, 0].set(labels.astype(jnp.int32))

    nbt = b_pad // tile_b
    nct = c_pad // tile_c

    vmem_limit = min(max(int(_vmem_estimate(tile_b, tile_c, d_pad) * 1.5),
                         16 << 20), 48 << 20)

    kernel = functools.partial(_softmax_ce_kernel, tile_c=tile_c)

    loss_rows, correct_rows = pl.pallas_call(
        kernel,
        out_shape=(
            jax.ShapeDtypeStruct((b_pad, 1), jnp.float32),
            jax.ShapeDtypeStruct((b_pad, 1), jnp.float32),
        ),
        grid=(nbt, nct),
        in_specs=[
            pl.BlockSpec((tile_b, d_pad), lambda i, j: (i, 0)),   # embeddings (bf16)
            # NOTE: add pipeline_mode=pl.Buffered(3) here if profiling shows the
            # weight DMA still exposed after enlarging tile_c.
            pl.BlockSpec((d_pad, tile_c), lambda i, j: (0, j)),   # weights [D, C] bf16
            pl.BlockSpec((1, tile_c), lambda i, j: (0, j)),       # bias (mask baked in)
            pl.BlockSpec((tile_b, 1), lambda i, j: (i, 0)),       # labels
        ],
        out_specs=(
            pl.BlockSpec((tile_b, 1), lambda i, j: (i, 0)),       # per-row loss
            pl.BlockSpec((tile_b, 1), lambda i, j: (i, 0)),       # per-row correct
        ),
        scratch_shapes=[
            pltpu.VMEM((tile_b, 1), jnp.float32),   # running max m
            pltpu.VMEM((tile_b, 1), jnp.float32),   # running sum-exp l
            pltpu.VMEM((tile_b, 1), jnp.float32),   # target logit
            pltpu.VMEM((tile_b, 1), jnp.int32),     # running argmax index
        ],
        compiler_params=pltpu.CompilerParams(
            dimension_semantics=("parallel", "arbitrary"),
            vmem_limit_bytes=vmem_limit),
    )(emb_p, w_p, bias_p, lab_p)

    loss = jnp.sum(loss_rows[:B, 0]) / jnp.float32(B)
    acc = jnp.sum(correct_rows[:B, 0]) / jnp.float32(B)
    return loss, acc


if __name__ == "__main__":
    # Small, deterministic setup consistent with the module's __init__/forward.
    embedding_size = 64
    num_classes = 200
    batch = 16

    key = jax.random.PRNGKey(0)
    k_e, k_w, k_b, k_l = jax.random.split(key, 4)

    embeddings = jax.random.normal(k_e, (batch, embedding_size), jnp.float32)
    # nn.Linear default init: U(-1/sqrt(fan_in), 1/sqrt(fan_in))
    bound = 1.0 / (embedding_size ** 0.5)
    weights = jax.random.uniform(k_w, (num_classes, embedding_size), jnp.float32,
                                 -bound, bound)
    bias = jax.random.uniform(k_b, (num_classes,), jnp.float32, -bound, bound)
    labels = jax.random.randint(k_l, (batch,), 0, num_classes, jnp.int32)

    # Tile selection + one-time parameter prep (hoisted out of the forward path).
    tile_c = choose_tile_c(num_classes, embedding_size)
    tile_b = choose_tile_b(batch)
    w_p, bias_p = prepare_softmax_params(weights, bias, tile_c=tile_c)
    jax.block_until_ready((w_p, bias_p))

    loss, acc = softmax_ce_forward(embeddings, labels, w_p, bias_p,
                                   tile_b=tile_b, tile_c=tile_c)
    jax.block_until_ready((loss, acc))

    # Pure-JAX reference (matched bf16 operand rounding, f32 accumulation).
    e_b = embeddings.astype(jnp.bfloat16).astype(jnp.float32)
    w_b = weights.astype(jnp.bfloat16).astype(jnp.float32)
    logits = jnp.dot(e_b, w_b.T, precision=jax.lax.Precision.HIGHEST) + bias
    m = jnp.max(logits, axis=1, keepdims=True)
    lse = (m + jnp.log(jnp.sum(jnp.exp(logits - m), axis=1, keepdims=True)))[:, 0]
    tgt = jnp.take_along_axis(logits, labels[:, None], axis=1)[:, 0]
    ref_loss = jnp.mean(lse - tgt)
    ref_acc = jnp.mean((jnp.argmax(logits, axis=1) == labels).astype(jnp.float32))

    assert abs(float(loss) - float(ref_loss)) < 2e-2, (float(loss), float(ref_loss))
    assert abs(float(acc) - float(ref_acc)) < 1e-6, (float(acc), float(ref_acc))
    print("KERNEL_OK")
</pallas_src>

<mosaic_0001>
module attributes {stable_mosaic.version = 11 : i64} {
  func.func @_softmax_ce_kernel(%arg0: i32, %arg1: i32, %arg2: memref<16x64xbf16, #tpu.memory_space<vmem>>, %arg3: memref<64x256xbf16, #tpu.memory_space<vmem>>, %arg4: memref<1x256xf32, #tpu.memory_space<vmem>>, %arg5: memref<16x1xi32, #tpu.memory_space<vmem>>, %arg6: memref<16x1xf32, #tpu.memory_space<vmem>>, %arg7: memref<16x1xf32, #tpu.memory_space<vmem>>, %arg8: memref<16x1xf32, #tpu.memory_space<vmem>>, %arg9: memref<16x1xf32, #tpu.memory_space<vmem>>, %arg10: memref<16x1xf32, #tpu.memory_space<vmem>>, %arg11: memref<16x1xi32, #tpu.memory_space<vmem>>) attributes {dimension_semantics = [#tpu.dimension_semantics<parallel>, #tpu.dimension_semantics<arbitrary>], iteration_bounds = array<i64: 1, 1>, scalar_prefetch = 0 : i64, scratch_operands = 4 : i64, tpu.core_type = #tpu.core_type<tc>, window_params = [{transform_indices = @transform_0, window_bounds = array<i64: 16, 64>}, {transform_indices = @transform_1, window_bounds = array<i64: 64, 256>}, {transform_indices = @transform_2, window_bounds = array<i64: 1, 256>}, {transform_indices = @transform_3, window_bounds = array<i64: 16, 1>}, {transform_indices = @transform_4, window_bounds = array<i64: 16, 1>}, {transform_indices = @transform_5, window_bounds = array<i64: 16, 1>}]} {
    %c0_i32 = arith.constant 0 : i32
    %0 = arith.cmpi eq, %arg1, %c0_i32 : i32
    %1 = arith.extui %0 : i1 to i32
    %c0_i32_0 = arith.constant 0 : i32
    %2 = arith.cmpi ne, %1, %c0_i32_0 : i32
    scf.if %2 {
      %cst_30 = arith.constant -1.000000e+30 : f32
      %53 = vector.broadcast %cst_30 : f32 to vector<16x1xf32>
      %c0_31 = arith.constant 0 : index
      %c0_32 = arith.constant 0 : index
      %54 = vector.load %arg8[%c0_31, %c0_32] : memref<16x1xf32, #tpu.memory_space<vmem>>, vector<16x1xf32>
      tpu.vector_store %arg8[%c0_31, %c0_32], %53 {strides = array<i32>} : memref<16x1xf32, #tpu.memory_space<vmem>>, vector<16x1xf32>,
      %cst_33 = arith.constant 0.000000e+00 : f32
      %55 = vector.broadcast %cst_33 : f32 to vector<16x1xf32>
      %c0_34 = arith.constant 0 : index
      %c0_35 = arith.constant 0 : index
      %56 = vector.load %arg9[%c0_34, %c0_35] : memref<16x1xf32, #tpu.memory_space<vmem>>, vector<16x1xf32>
      tpu.vector_store %arg9[%c0_34, %c0_35], %55 {strides = array<i32>} : memref<16x1xf32, #tpu.memory_space<vmem>>, vector<16x1xf32>,
      %cst_36 = arith.constant 0.000000e+00 : f32
      %57 = vector.broadcast %cst_36 : f32 to vector<16x1xf32>
      %c0_37 = arith.constant 0 : index
      %c0_38 = arith.constant 0 : index
      %58 = vector.load %arg10[%c0_37, %c0_38] : memref<16x1xf32, #tpu.memory_space<vmem>>, vector<16x1xf32>
      tpu.vector_store %arg10[%c0_37, %c0_38], %57 {strides = array<i32>} : memref<16x1xf32, #tpu.memory_space<vmem>>, vector<16x1xf32>,
      %c0_i32_39 = arith.constant 0 : i32
      %59 = vector.broadcast %c0_i32_39 : i32 to vector<16x1xi32>
      %c0_40 = arith.constant 0 : index
      %c0_41 = arith.constant 0 : index
      %60 = vector.load %arg11[%c0_40, %c0_41] : memref<16x1xi32, #tpu.memory_space<vmem>>, vector<16x1xi32>
      tpu.vector_store %arg11[%c0_40, %c0_41], %59 {strides = array<i32>} : memref<16x1xi32, #tpu.memory_space<vmem>>, vector<16x1xi32>,
    } else {
    }
    %c0 = arith.constant 0 : index
    %c0_1 = arith.constant 0 : index
    %3 = vector.load %arg2[%c0, %c0_1] : memref<16x64xbf16, #tpu.memory_space<vmem>>, vector<16x64xbf16>
    %c0_2 = arith.constant 0 : index
    %c0_3 = arith.constant 0 : index
    %4 = vector.load %arg3[%c0_2, %c0_3] : memref<64x256xbf16, #tpu.memory_space<vmem>>, vector<64x256xbf16>
    %c0_4 = arith.constant 0 : index
    %c0_5 = arith.constant 0 : index
    %5 = vector.load %arg4[%c0_4, %c0_5] : memref<1x256xf32, #tpu.memory_space<vmem>>, vector<1x256xf32>
    %c0_6 = arith.constant 0 : index
    %c0_7 = arith.constant 0 : index
    %6 = vector.load %arg5[%c0_6, %c0_7] : memref<16x1xi32, #tpu.memory_space<vmem>>, vector<16x1xi32>
    %cst = arith.constant dense<0.000000e+00> : vector<16x256xf32>
    %7 = tpu.matmul %3, %4, %cst {dimension_numbers = #tpu.dot_dimension_numbers<[1], [0], [0], [1], [0, 0, 1, 1], [], []>} : vector<16x64xbf16>, vector<64x256xbf16>, vector<16x256xf32> -> vector<16x256xf32>
    %8 = vector.broadcast %5 : vector<1x256xf32> to vector<16x256xf32>
    %9 = arith.addf %7, %8 : vector<16x256xf32>
    %10 = tpu.iota {dimensions = array<i32: 1>} : vector<16x256xi32>
    %c256_i32 = arith.constant 256 : i32
    %11 = arith.muli %arg1, %c256_i32 : i32
    %12 = vector.broadcast %11 : i32 to vector<16x256xi32>
    %13 = arith.addi %10, %12 : vector<16x256xi32>
    %cst_8 = arith.constant dense<0xFF800000> : vector<16xf32>
    %14 = vector.multi_reduction <maximumf>, %9, %cst_8 [1] : vector<16x256xf32> to vector<16xf32>
    %15 = vector.shape_cast %14 : vector<16xf32> to vector<16x1xf32>
    %c0_9 = arith.constant 0 : index
    %c0_10 = arith.constant 0 : index
    %16 = vector.load %arg8[%c0_9, %c0_10] : memref<16x1xf32, #tpu.memory_space<vmem>>, vector<16x1xf32>
    %17 = arith.maximumf %16, %15 : vector<16x1xf32>
    %18 = vector.broadcast %17 : vector<16x1xf32> to vector<16x256xf32>
    %19 = arith.subf %9, %18 : vector<16x256xf32>
    %20 = math.exp %19 : vector<16x256xf32>
    %21 = arith.subf %16, %17 : vector<16x1xf32>
    %22 = math.exp %21 : vector<16x1xf32>
    %c0_11 = arith.constant 0 : index
    %c0_12 = arith.constant 0 : index
    %23 = vector.load %arg9[%c0_11, %c0_12] : memref<16x1xf32, #tpu.memory_space<vmem>>, vector<16x1xf32>
    %24 = arith.mulf %22, %23 : vector<16x1xf32>
    %cst_13 = arith.constant dense<0.000000e+00> : vector<16xf32>
    %25 = vector.multi_reduction <add>, %20, %cst_13 [1] : vector<16x256xf32> to vector<16xf32>
    %26 = vector.shape_cast %25 : vector<16xf32> to vector<16x1xf32>
    %27 = arith.addf %24, %26 : vector<16x1xf32>
    %c0_14 = arith.constant 0 : index
    %c0_15 = arith.constant 0 : index
    %28 = vector.load %arg9[%c0_14, %c0_15] : memref<16x1xf32, #tpu.memory_space<vmem>>, vector<16x1xf32>
    tpu.vector_store %arg9[%c0_14, %c0_15], %27 {strides = array<i32>} : memref<16x1xf32, #tpu.memory_space<vmem>>, vector<16x1xf32>,
    %29 = vector.broadcast %6 : vector<16x1xi32> to vector<16x256xi32>
    %30 = arith.cmpi eq, %13, %29 : vector<16x256xi32>
    %31 = arith.extui %30 : vector<16x256xi1> to vector<16x256xi32>
    %32 = arith.sitofp %31 : vector<16x256xi32> to vector<16x256xf32>
    %c0_16 = arith.constant 0 : index
    %c0_17 = arith.constant 0 : index
    %33 = vector.load %arg10[%c0_16, %c0_17] : memref<16x1xf32, #tpu.memory_space<vmem>>, vector<16x1xf32>
    %34 = arith.mulf %9, %32 : vector<16x256xf32>
    %cst_18 = arith.constant dense<0.000000e+00> : vector<16xf32>
    %35 = vector.multi_reduction <add>, %34, %cst_18 [1] : vector<16x256xf32> to vector<16xf32>
    %36 = vector.shape_cast %35 : vector<16xf32> to vector<16x1xf32>
    %37 = arith.addf %33, %36 : vector<16x1xf32>
    %c0_19 = arith.constant 0 : index
    %c0_20 = arith.constant 0 : index
    %38 = vector.load %arg10[%c0_19, %c0_20] : memref<16x1xf32, #tpu.memory_space<vmem>>, vector<16x1xf32>
    tpu.vector_store %arg10[%c0_19, %c0_20], %37 {strides = array<i32>} : memref<16x1xf32, #tpu.memory_space<vmem>>, vector<16x1xf32>,
    %39 = vector.broadcast %15 : vector<16x1xf32> to vector<16x256xf32>
    %40 = arith.cmpf oeq, %9, %39 : vector<16x256xf32>
    %c1073741824_i32 = arith.constant 1073741824 : i32
    %41 = vector.broadcast %c1073741824_i32 : i32 to vector<16x256xi32>
    %42 = arith.select %40, %13, %41 : vector<16x256xi1>, vector<16x256xi32>
    %cst_21 = arith.constant dense<2147483647> : vector<16xi32>
    %43 = vector.multi_reduction <minsi>, %42, %cst_21 [1] : vector<16x256xi32> to vector<16xi32>
    %44 = vector.shape_cast %43 : vector<16xi32> to vector<16x1xi32>
    %45 = arith.cmpf ogt, %15, %16 : vector<16x1xf32>
    %c0_22 = arith.constant 0 : index
    %c0_23 = arith.constant 0 : index
    %46 = vector.load %arg11[%c0_22, %c0_23] : memref<16x1xi32, #tpu.memory_space<vmem>>, vector<16x1xi32>
    %47 = arith.select %45, %44, %46 : vector<16x1xi1>, vector<16x1xi32>
    %c0_24 = arith.constant 0 : index
    %c0_25 = arith.constant 0 : index
    %48 = vector.load %arg11[%c0_24, %c0_25] : memref<16x1xi32, #tpu.memory_space<vmem>>, vector<16x1xi32>
    tpu.vector_store %arg11[%c0_24, %c0_25], %47 {strides = array<i32>} : memref<16x1xi32, #tpu.memory_space<vmem>>, vector<16x1xi32>,
    %c0_26 = arith.constant 0 : index
    %c0_27 = arith.constant 0 : index
    %49 = vector.load %arg8[%c0_26, %c0_27] : memref<16x1xf32, #tpu.memory_space<vmem>>, vector<16x1xf32>
    tpu.vector_store %arg8[%c0_26, %c0_27], %17 {strides = array<i32>} : memref<16x1xf32, #tpu.memory_space<vmem>>, vector<16x1xf32>,
    %c0_i32_28 = arith.constant 0 : i32
    %50 = arith.cmpi eq, %arg1, %c0_i32_28 : i32
    %51 = arith.extui %50 : i1 to i32
    %c0_i32_29 = arith.constant 0 : i32
    %52 = arith.cmpi ne, %51, %c0_i32_29 : i32
    scf.if %52 {
      %c0_30 = arith.constant 0 : index
      %c0_31 = arith.constant 0 : index
      %53 = vector.load %arg8[%c0_30, %c0_31] : memref<16x1xf32, #tpu.memory_space<vmem>>, vector<16x1xf32>
      %c0_32 = arith.constant 0 : index
      %c0_33 = arith.constant 0 : index
      %54 = vector.load %arg9[%c0_32, %c0_33] : memref<16x1xf32, #tpu.memory_space<vmem>>, vector<16x1xf32>
      %55 = math.log %54 : vector<16x1xf32>
      %56 = arith.addf %53, %55 : vector<16x1xf32>
      %c0_34 = arith.constant 0 : index
      %c0_35 = arith.constant 0 : index
      %57 = vector.load %arg10[%c0_34, %c0_35] : memref<16x1xf32, #tpu.memory_space<vmem>>, vector<16x1xf32>
      %58 = arith.subf %56, %57 : vector<16x1xf32>
      %c0_36 = arith.constant 0 : index
      %c0_37 = arith.constant 0 : index
      %59 = vector.load %arg6[%c0_36, %c0_37] : memref<16x1xf32, #tpu.memory_space<vmem>>, vector<16x1xf32>
      tpu.vector_store %arg6[%c0_36, %c0_37], %58 {strides = array<i32>} : memref<16x1xf32, #tpu.memory_space<vmem>>, vector<16x1xf32>,
      %c0_38 = arith.constant 0 : index
      %c0_39 = arith.constant 0 : index
      %60 = vector.load %arg11[%c0_38, %c0_39] : memref<16x1xi32, #tpu.memory_space<vmem>>, vector<16x1xi32>
      %61 = arith.cmpi eq, %60, %6 : vector<16x1xi32>
      %62 = arith.extui %61 : vector<16x1xi1> to vector<16x1xi32>
      %63 = arith.sitofp %62 : vector<16x1xi32> to vector<16x1xf32>
      %c0_40 = arith.constant 0 : index
      %c0_41 = arith.constant 0 : index
      %64 = vector.load %arg7[%c0_40, %c0_41] : memref<16x1xf32, #tpu.memory_space<vmem>>, vector<16x1xf32>
      tpu.vector_store %arg7[%c0_40, %c0_41], %63 {strides = array<i32>} : memref<16x1xf32, #tpu.memory_space<vmem>>, vector<16x1xf32>,
    } else {
    }
    return
  }
  func.func @transform_0(%arg0: i32, %arg1: i32) -> (i32, i32) {
    %c0_i32 = arith.constant 0 : i32
    %c0_i32_0 = arith.constant 0 : i32
    return %arg0, %c0_i32 : i32, i32
  }
  func.func @transform_1(%arg0: i32, %arg1: i32) -> (i32, i32) {
    %c0_i32 = arith.constant 0 : i32
    %c0_i32_0 = arith.constant 0 : i32
    return %c0_i32, %arg1 : i32, i32
  }
  func.func @transform_2(%arg0: i32, %arg1: i32) -> (i32, i32) {
    %c0_i32 = arith.constant 0 : i32
    %c0_i32_0 = arith.constant 0 : i32
    return %c0_i32, %arg1 : i32, i32
  }
  func.func @transform_3(%arg0: i32, %arg1: i32) -> (i32, i32) {
    %c0_i32 = arith.constant 0 : i32
    %c0_i32_0 = arith.constant 0 : i32
    return %arg0, %c0_i32 : i32, i32
  }
  func.func @transform_4(%arg0: i32, %arg1: i32) -> (i32, i32) {
    %c0_i32 = arith.constant 0 : i32
    %c0_i32_0 = arith.constant 0 : i32
    return %arg0, %c0_i32 : i32, i32
  }
  func.func @transform_5(%arg0: i32, %arg1: i32) -> (i32, i32) {
    %c0_i32 = arith.constant 0 : i32
    %c0_i32_0 = arith.constant 0 : i32
    return %arg0, %c0_i32 : i32, i32
  }
}

</mosaic_0001>

<bundles_post_ra>
// kernel: tpu_custom_call.1
= control target key start
LH: loop header
LB: loop body
LE: loop exit
PB: predicated region body
PF: predicated region fallthrough
CT: control target
= control target key end

     0   :  { %11 = vsyncpa [#allocation7], 0  ;;  %s430_s21 = smov [#allocation6]   ;;  %s431_s23 = smov 128   ;;  %s609_s0 = inlined_call_operand.vmem [shape: bf16[16,64], index: 0, kind: input, shape index: {}]   ;;  %s610_s1 = inlined_call_operand.hbm [shape: bf16[64,256], index: 1, kind: input, shape index: {}]   ;;  %s611_s2 = inlined_call_operand.vmem [shape: f32[1,256], index: 2, kind: input, shape index: {}]   ;;  %s612_s3 = inlined_call_operand.vmem [shape: s32[16,1], index: 3, kind: input, shape index: {}]   ;;  %s613_s4 = inlined_call_operand.vmem [shape: f32[16,1], index: 4, kind: output, shape index: {0}]   ;;  %s614_s5 = inlined_call_operand.vmem [shape: f32[16,1], index: 5, kind: output, shape index: {1}]  }
   0x1   :  { %s18_s20 = sshll.u32 %s610_s1, 4  ;;  %s20_s22 = sshll.u32 %s430_s21, 4  ;;  %s19_s20 = int_to_ptr.hbm [resolvable:$true] %s18_s20  ;;  %s21_s22 = int_to_ptr.vmem [resolvable:$true] %s20_s22 }
   0x2   :  { %s432_s24 = smov 8  }
   0x3   :  { %26 = dma.hbm_to_vmem [thread:$0]  %s19_s20, 1024, %s21_s22, [#allocation7], %s431_s23, %s431_s23, %s432_s24  }
   0x4   :  { %428 = dma.done.wait [#allocation7], 1024  }
   0x5   :  { %429 = vsyncadd [#allocation7], 4294966272  ;;  %vm40_vm0 = vcmask 7168   ;;  %v433_v0 = vmov 0   ;;  %v434_v1 = vmov 0.0   ;;  %v482_v18 = vld [vmem:[%s612_s3] sm:$0xff]  ;;  %v144_v43 = vlaneseq }
   0x6   :  { %385 = vset.pattern.permute.xlu2 %v433_v0  ;;  %47 = vst.msk [vmem:[#allocation5] sm:$0xff] %vm40_vm0, %v433_v0  ;;  %386 = vset.pattern.permute.xlu1 %v433_v0  ;;  %v356_v2 = vld [vmem:[#allocation6 + $0x30] sm:$0xf]  ;;  %v378_v3 = vld [vmem:[#allocation6 + $0x34] sm:$0xf0]  ;;  %v488_v26 = vld [vmem:[%s612_s3 + $0x8] sm:$0xff] }
   0x7   :  { %48 = vst.msk [vmem:[#allocation5 + $0x8] sm:$0xff] %vm40_vm0, %v433_v0  ;;  %387 = vset.pattern.permute.xlu0 %v433_v0  ;;  %v377_v4 = vld [vmem:[#allocation6 + $0x34] sm:$0xf]  ;;  %v357_v5 = vor.u32 %v378_v3, %v356_v2  ;;  %v358_v6 = vld [vmem:[#allocation6 + $0x38] sm:$0xf0]  ;;  %205 = vperm.xlu2 %385, %v482_v18   ;;  %v370_v28 = vld [vmem:[%s609_s0] sm:$0xff] }
   0x8   :  { %43 = vst.msk [vmem:[#allocation3] sm:$0xff] %vm40_vm0, %v434_v1  ;;  %v348_v7 = vld [vmem:[#allocation6 + $0x20] sm:$0xf]  ;;  %v376_v8 = vld [vmem:[#allocation6 + $0x24] sm:$0xf0]  ;;  %v361_v9 = vor.u32 %v377_v4, %v358_v6  ;;  %vm112_vm1 = vcmask 523264  }
   0x9   :  { %44 = vst.msk [vmem:[#allocation3 + $0x8] sm:$0xff] %vm40_vm0, %v434_v1  ;;  %v375_v10 = vld [vmem:[#allocation6 + $0x24] sm:$0xf]  ;;  %v350_v11 = vld [vmem:[#allocation6 + $0x28] sm:$0xf0]  ;;  %120 = vmatpush.bf16.msra.mxu0 %v357_v5  ;;  %v349_v12 = vor.u32 %v376_v8, %v348_v7  ;;  %v511_v44 = vand.u32 127, %v144_v43 }
   0xa   :  { %45 = vst.msk [vmem:[#allocation4] sm:$0xff] %vm40_vm0, %v434_v1  ;;  %134 = vmatpush.bf16.msra.mxu1 %v361_v9  ;;  %v353_v13 = vor.u32 %v375_v10, %v350_v11  ;;  %v340_v14 = vld [vmem:[#allocation6 + $0x10] sm:$0xf]  ;;  %v374_v15 = vld [vmem:[#allocation6 + $0x14] sm:$0xf0] }
   0xb   :  { %46 = vst.msk [vmem:[#allocation4 + $0x8] sm:$0xff] %vm40_vm0, %v434_v1  ;;  %v373_v16 = vld [vmem:[#allocation6 + $0x14] sm:$0xf]  ;;  %v342_v17 = vld [vmem:[#allocation6 + $0x18] sm:$0xf0]  ;;  %v341_v19 = vor.u32 %v374_v15, %v340_v14  ;;  %v516_v46 = vadd.s32 128, %v511_v44 }
   0xc   :  { %v345_v20 = vor.u32 %v373_v16, %v342_v17  ;;  %v332_v21 = vld [vmem:[#allocation6] sm:$0xf]  ;;  %v372_v22 = vld [vmem:[#allocation6 + $0x4] sm:$0xf0]  ;;  %v371_v23 = vld [vmem:[#allocation6 + $0x4] sm:$0xf] }
   0xd   :  { %121 = vmatpush.bf16.msra.mxu0 %v349_v12  ;;  %v334_v24 = vld [vmem:[#allocation6 + $0x8] sm:$0xf0]  ;;  %v333_v25 = vor.u32 %v372_v22, %v332_v21  ;;  %v435_v29 = vmov -1e+30   ;;  %v59_v30 = vld [vmem:[%s611_s2] sm:$0x3] }
   0xe   :  { %135 = vmatpush.bf16.msra.mxu1 %v353_v13  ;;  %v337_v27 = vor.u32 %v371_v23, %v334_v24  ;;  %41 = vst.msk [vmem:[#allocation2] sm:$0xff] %vm40_vm0, %v435_v29  ;;  %v63_v31 = vperm.slane %v59_v30, 0  ;;  %v64_v32 = vperm.slane %v59_v30, 1 }
   0xf   :  { %208 = vperm.xlu2 %385, %v488_v26   ;;  %42 = vst.msk [vmem:[#allocation2 + $0x8] sm:$0xff] %vm40_vm0, %v435_v29 }
  0x11   :  { %122 = vmatpush.bf16.msra.mxu0 %v341_v19 }
  0x12   :  { %136 = vmatpush.bf16.msra.mxu1 %v345_v20 }
  0x15   :  { %123 = vmatpush.bf16.msra.mxu0 %v333_v25  ;;  %v513_v45 = vld [vmem:[#allocation2] sm:$0xff] }
  0x16   :  { %137 = vmatpush.bf16.msra.mxu1 %v337_v27  ;;  %v537_v54 = vld [vmem:[#allocation2 + $0x8] sm:$0xff] }
  0x18   :  { %362 = vmatmul.msk.bf16.vlgmr.msra.gmra.mxu0 %vm112_vm1, %v370_v28 }
  0x19   :  { %363 = vmatmul.msk.bf16.vlgmr.msra.gmra.mxu1 %vm112_vm1, %v370_v28 }
  0x61   :  { %v206_v22 = vpop.permute.xlu2 %205 }
  0x62   :  { %vm210_vm11 = vcmp.eq.s32.totalorder %v511_v44, %v206_v22  ;;  %vm211_vm12 = vcmp.eq.s32.totalorder %v516_v46, %v206_v22 }
  0x63   :  { %v364_v28 = vsel %vm210_vm11, 1.0, %v434_v1  ;;  %v365_v29 = vsel %vm211_vm12, 1.0, %v434_v1 }
  0x69   :  { %v209_v30 = vpop.permute.xlu2 %208 }
  0x6a   :  { %vm212_vm13 = vcmp.eq.s32.totalorder %v511_v44, %v209_v30  ;;  %vm213_vm14 = vcmp.eq.s32.totalorder %v516_v46, %v209_v30 }
  0x95   :  { %v125_v33 = vpop.f32.mrf.mxu0 }
  0x96   :  { %v499_v34 = vadd.f32 %v125_v33, %v63_v31  ;;  %v139_v35 = vpop.f32.mrf.mxu1 }
  0x97   :  { %v501_v36 = vadd.f32 %v139_v35, %v64_v32  ;;  %v366_v35 = vsel %vm212_vm13, 1.0, %v434_v1 }
  0x99   :  { %v151_v37 = vmax.f32 %v499_v34, %v501_v36 }
  0x9b   :  { %152 = vmax.xlane.f32.xlu0 %v151_v37  ;;  %v367_v37 = vsel %vm213_vm14, 1.0, %v434_v1 }
  0x9d   :  { %v127_v38 = vpop.f32.mrf.mxu0 }
  0x9e   :  { %v505_v39 = vadd.f32 %v127_v38, %v63_v31  ;;  %v141_v40 = vpop.f32.mrf.mxu1  ;;  %v224_v31 = vmul.f32 %v364_v28, %v499_v34 }
  0x9f   :  { %v507_v41 = vadd.f32 %v141_v40, %v64_v32  ;;  %v225_v32 = vmul.f32 %v365_v29, %v501_v36 }
  0xa0   :  { %v226_v38 = vmul.f32 %v366_v35, %v505_v39 }
  0xa1   :  { %v154_v42 = vmax.f32 %v505_v39, %v507_v41  ;;  %v228_v33 = vadd.f32 %v225_v32, %v224_v31  ;;  %v227_v40 = vmul.f32 %v367_v37, %v507_v41 }
  0xa3   :  { %155 = vmax.xlane.f32.xlu0 %v154_v42  ;;  %v231_v42 = vadd.f32 %v227_v40, %v226_v38 }
 0x10e   :  { %v518_v47 = vpop.xlane.xlu0 %152 }
 0x10f   :  { %vm238_vm2 = vcmp.eq.f32.partialorder %v499_v34, %v518_v47  ;;  %vm239_vm3 = vcmp.eq.f32.partialorder %v501_v36, %v518_v47  ;;  %vm278_vm4 = vcmp.gt.f32.partialorder %v518_v47, %v513_v45  ;;  %v528_v48 = vmax.f32 %v513_v45, %v518_v47 }
 0x110   :  { %v242_v49 = vsel %vm238_vm2, %v511_v44, 1073741824  ;;  %v243_v50 = vsel %vm239_vm3, %v516_v46, 1073741824 }
 0x111   :  { %163 = vperm.xlu1 %386, %v528_v48   ;;  %v183_v51 = vsub.f32 %v513_v45, %v528_v48  ;;  %286 = vst.msk [vmem:[#allocation2] sm:$0xff] %vm40_vm0, %v528_v48  ;;  %vm246_vm5 = vcmp.lt.s32.totalorder %v242_v49, %v243_v50 }
 0x112   :  { %v247_v52 = vsel %vm246_vm5, %v242_v49, %v243_v50  ;;  %v189_v50 = vld [vmem:[#allocation3] sm:$0xff] }
 0x113   :  { %v249_v53 = vshra.s32 %v247_v52, 16  ;;  %v248_v6 = vand.u32 65535, %v247_v52  ;;  %v280_v52 = vld [vmem:[#allocation5] sm:$0xff] }
 0x115   :  { %v251_v55 = vcvt.s32.f32 %v249_v53  ;;  %v250_v8 = vcvt.s32.f32 %v248_v6 }
 0x116   :  { %v539_v56 = vpop.xlane.xlu0 %155 }
 0x117   :  { %252 = vmin.xlane.f32.xlu0 %v251_v55  ;;  %v543_v57 = vmax.f32 %v537_v54, %v539_v56  ;;  %vm240_vm6 = vcmp.eq.f32.partialorder %v505_v39, %v539_v56  ;;  %vm241_vm7 = vcmp.eq.f32.partialorder %v507_v41, %v539_v56  ;;  %vm279_vm1 = vcmp.gt.f32.partialorder %v539_v56, %v537_v54 }
 0x118   :  { %v244_v59 = vsel %vm240_vm6, %v511_v44, 1073741824  ;;  %v245_v60 = vsel %vm241_vm7, %v516_v46, 1073741824 }
 0x119   :  { %v184_v58 = vsub.f32 %v537_v54, %v543_v57  ;;  %287 = vst.msk [vmem:[#allocation2 + $0x8] sm:$0xff] %vm40_vm0, %v543_v57  ;;  %168 = vperm.xlu1 %386, %v543_v57   ;;  %vm262_vm8 = vcmp.lt.s32.totalorder %v244_v59, %v245_v60 }
 0x11a   :  { %v263_v61 = vsel %vm262_vm8, %v244_v59, %v245_v60 }
 0x11b   :  { %v265_v62 = vshra.s32 %v263_v61, 16  ;;  %v264_v19 = vand.u32 65535, %v263_v61  ;;  %v187_v45 = vmul.f32 1.442695, %v184_v58 }
 0x11d   :  { %v267_v63 = vcvt.s32.f32 %v265_v62  ;;  %v266_v21 = vcvt.s32.f32 %v264_v19 }
 0x143   :  { %268 = vmin.xlane.f32.xlu1 %v267_v63 }
 0x183   :  { %v164_v0 = vpop.permute.xlu1 %163 }
 0x184   :  { %v171_v2 = vsub.f32 %v499_v34, %v164_v0  ;;  %v172_v3 = vsub.f32 %v501_v36, %v164_v0  ;;  %v185_v34 = vmul.f32 1.442695, %v183_v51 }
 0x186   :  { %v175_v4 = vmul.f32 1.442695, %v171_v2  ;;  %v177_v5 = vmul.f32 1.442695, %v172_v3 }
 0x188   :  { %388 = vpow2.f32 %v175_v4 }
 0x189   :  { %390 = vpow2.f32 %v177_v5 }
 0x18a   :  { %v253_v7 = vpop.xlane.xlu0 %252 }
 0x18b   :  { %vm254_vm9 = vcmp.eq.f32.partialorder %v251_v55, %v253_v7  ;;  %v169_v13 = vpop.permute.xlu1 %168  ;;  %v259_v36 = vcvt.f32.s32 %v253_v7  ;;  %v222_v7 = vld [vmem:[#allocation4] sm:$0xff] }
 0x18c   :  { %v255_v9 = vsel %vm254_vm9, %v250_v8, inf  ;;  %v173_v14 = vsub.f32 %v505_v39, %v169_v13  ;;  %v174_v15 = vsub.f32 %v507_v41, %v169_v13  ;;  %v291_v13 = vld [vmem:[#allocation2] sm:$0xff] }
 0x18d   :  { %256 = vmin.xlane.f32.xlu0 %v255_v9  ;;  %v260_v46 = vshll.u32 %v259_v36, 16 }
 0x18e   :  { %v389_v10 = vpop.eup %388  ;;  %v179_v16 = vmul.f32 1.442695, %v173_v14  ;;  %v181_v17 = vmul.f32 1.442695, %v174_v15 }
 0x18f   :  { %v391_v11 = vpop.eup %390 }
 0x190   :  { %v193_v12 = vadd.f32 %v391_v11, %v389_v10  ;;  %392 = vpow2.f32 %v179_v16 }
 0x191   :  { %394 = vpow2.f32 %v181_v17 }
 0x192   :  { %194 = vadd.xlane.f32.xlu2 %v193_v12  ;;  %396 = vpow2.f32 %v185_v34  ;;  %v223_v12 = vld [vmem:[#allocation4 + $0x8] sm:$0xff] }
 0x193   :  { %398 = vpow2.f32 %v187_v45 }
 0x196   :  { %v393_v24 = vpop.eup %392 }
 0x197   :  { %v395_v25 = vpop.eup %394 }
 0x198   :  { %v196_v27 = vadd.f32 %v395_v25, %v393_v24  ;;  %v397_v44 = vpop.eup %396 }
 0x199   :  { %v191_v55 = vmul.f32 %v397_v44, %v189_v50  ;;  %v399_v2 = vpop.eup %398 }
 0x1b6   :  { %v269_v20 = vpop.xlane.xlu1 %268 }
 0x1b7   :  { %vm270_vm10 = vcmp.eq.f32.partialorder %v267_v63, %v269_v20  ;;  %v275_v47 = vcvt.f32.s32 %v269_v20  ;;  %v281_v63 = vld [vmem:[#allocation5 + $0x8] sm:$0xff]  ;;  %v292_v20 = vld [vmem:[#allocation2 + $0x8] sm:$0xff] }
 0x1b8   :  { %v271_v23 = vsel %vm270_vm10, %v266_v21, inf }
 0x1b9   :  { %272 = vmin.xlane.f32.xlu0 %v271_v23  ;;  %v276_v61 = vshll.u32 %v275_v47, 16 }
 0x1c1   :  { %197 = vadd.xlane.f32.xlu0 %v196_v27 }
 0x1c9   :  { %229 = vadd.xlane.f32.xlu0 %v228_v33 }
 0x1d1   :  { %232 = vadd.xlane.f32.xlu0 %v231_v42 }
 0x200   :  { %v257_v43 = vpop.xlane.xlu0 %256 }
 0x201   :  { %v258_v49 = vcvt.f32.s32 %v257_v43 }
 0x203   :  { %v261_v53 = vadd.s32 %v260_v46, %v258_v49 }
 0x205   :  { %v282_v39 = vsel %vm278_vm4, %v261_v53, %v280_v52  ;;  %v195_v41 = vpop.xlane.xlu2 %194 }
 0x206   :  { %284 = vst.msk [vmem:[#allocation5] sm:$0xff] %vm40_vm0, %v282_v39  ;;  %v199_v59 = vadd.f32 %v195_v41, %v191_v55 }
 0x208   :  { %202 = vst.msk [vmem:[#allocation3] sm:$0xff] %vm40_vm0, %v199_v59 }
 0x20d   :  { %v307_v48 = vld [vmem:[#allocation5] sm:$0xff] }
 0x20e   :  { %vm309_vm15 = vcmp.eq.s32.totalorder %v307_v48, %v482_v18  ;;  %v190_v18 = vld [vmem:[#allocation3 + $0x8] sm:$0xff] }
 0x20f   :  { %v368_v51 = vsel %vm309_vm15, 1.0, %v434_v1  ;;  %v192_v4 = vmul.f32 %v399_v2, %v190_v18  ;;  %v293_v6 = vld [vmem:[#allocation3] sm:$0xff] }
 0x210   :  { %315 = vst.msk [vmem:[%s614_s5] sm:$0xff] %vm40_vm0, %v368_v51  ;;  %400 = vlog2.f32 %v293_v6 }
 0x216   :  { %v401_v9 = vpop.eup %400 }
 0x217   :  { %v296_v11 = vmul.f32 0.6931472, %v401_v9 }
 0x22c   :  { %v273_v60 = vpop.xlane.xlu0 %272 }
 0x22d   :  { %v274_v62 = vcvt.f32.s32 %v273_v60 }
 0x22f   :  { %v277_v0 = vadd.s32 %v276_v61, %v274_v62 }
 0x231   :  { %v283_v3 = vsel %vm279_vm1, %v277_v0, %v281_v63 }
 0x232   :  { %285 = vst.msk [vmem:[#allocation5 + $0x8] sm:$0xff] %vm40_vm0, %v283_v3 }
 0x234   :  { %v198_v5 = vpop.xlane.xlu0 %197 }
 0x235   :  { %v200_v57 = vadd.f32 %v198_v5, %v192_v4 }
 0x237   :  { %203 = vst.msk [vmem:[#allocation3 + $0x8] sm:$0xff] %vm40_vm0, %v200_v57 }
 0x239   :  { %v308_v58 = vld [vmem:[#allocation5 + $0x8] sm:$0xff] }
 0x23a   :  { %vm310_vm2 = vcmp.eq.s32.totalorder %v308_v58, %v488_v26  ;;  %v299_v26 = vadd.f32 %v296_v11, %v291_v13 }
 0x23b   :  { %v369_v8 = vsel %vm310_vm2, 1.0, %v434_v1 }
 0x23c   :  { %316 = vst.msk [vmem:[%s614_s5 + $0x8] sm:$0xff] %vm40_vm0, %v369_v8  ;;  %v230_v54 = vpop.xlane.xlu0 %229 }
 0x23d   :  { %v234_v56 = vadd.f32 %v230_v54, %v222_v7 }
 0x23e   :  { %v294_v10 = vld [vmem:[#allocation3 + $0x8] sm:$0xff] }
 0x23f   :  { %236 = vst.msk [vmem:[#allocation4] sm:$0xff] %vm40_vm0, %v234_v56  ;;  %402 = vlog2.f32 %v294_v10 }
 0x244   :  { %v233_v14 = vpop.xlane.xlu0 %232 }
 0x245   :  { %v235_v15 = vadd.f32 %v233_v14, %v223_v12  ;;  %v403_v16 = vpop.eup %402 }
 0x246   :  { %v301_v1 = vld [vmem:[#allocation4] sm:$0xff]  ;;  %v298_v19 = vmul.f32 0.6931472, %v403_v16 }
 0x247   :  { %v303_v17 = vsub.f32 %v299_v26, %v301_v1  ;;  %237 = vst.msk [vmem:[#allocation4 + $0x8] sm:$0xff] %vm40_vm0, %v235_v15 }
 0x248   :  { %v300_v21 = vadd.f32 %v298_v19, %v292_v20 }
 0x249   :  { %305 = vst.msk [vmem:[%s613_s4] sm:$0xff] %vm40_vm0, %v303_v17 }
 0x24e   :  { %v302_v22 = vld [vmem:[#allocation4 + $0x8] sm:$0xff] }
 0x24f   :  { %v304_v23 = vsub.f32 %v300_v21, %v302_v22 }
 0x251   :  { %306 = vst.msk [vmem:[%s613_s4 + $0x8] sm:$0xff] %vm40_vm0, %v304_v23 }
 0x252   :  { %325 = vsyncpa [#allocation7], 1 }

</bundles_post_ra>
